<compile_context>
chip_gen: v7x
topology: tpu7x:2x2x1
jax: 0.10.0
libtpu: 0.0.40
codegen_flags: <defaults>
</compile_context>

<pallas_src>
import functools
import math

import jax
import jax.numpy as jnp
from jax.experimental import pallas as pl

# ---------------- config (small, consistent with FutureDecoder.__init__) -----
P_PAST = 4        # number of past frames
T_FUT = 5         # cfg.dataset.future_frames
N_AGENT = 3       # data['agent_num']
S_SAMPLE = 2      # sample_num
D_FORECAST = 2    # cfg.dataset.forecast_dim
F_FEAT = 32       # cfg.network.feature_dim
NZ = 16           # cfg.network.nz
INPUT_TYPE = ('scene_norm',)   # cfg.network.input_type -> in_dim = 1 * forecast_dim
PRED_TYPE = 'scene_norm'       # cfg.network.pred_type
OUT_MLP_DIM = 0                # cfg.network.out_mlp_dim == 0 -> single out_fc
FFN_DIM = 64                   # hidden dim of the decoder feed-forward stand-in


# ----------------------------- fused Pallas kernel ----------------------------
def _fused_future_decoder_kernel(
    x_ref, ctx_ref, z_ref, last_ref, orig_ref, mask_ref,
    w_in_ref, b_in_ref,
    w_ctx_ref, b_ctx_ref, tmix_ref, qemb_ref,
    w_nz_ref, b_nz_ref,
    w_q_ref, b_q_ref, w_k_ref, b_k_ref, w_v_ref, b_v_ref,
    w_o_ref, b_o_ref, w_f1_ref, b_f1_ref, w_f2_ref, b_f2_ref,
    w_out_ref, b_out_ref,
    seq_ref, dec_ref, *, scale):
  """Whole FutureDecoder forward; all intermediates stay in VMEM/vregs.

  Row layouts:
    x/ctx rows  : (past p, agent n, sample s) flattened  -> P*N*S rows
    query rows  : (future t, agent n, sample s) flattened -> T*N*S rows
  """
  dot = lambda a, b: jnp.dot(a, b, preferred_element_type=jnp.float32)

  # ---- input_fc : (P*N*S, in_dim) -> (P*N*S, F)
  tf_in = dot(x_ref[...], w_in_ref[...]) + b_in_ref[...]

  # ---- QGB stand-in: context projection + (T x P) time mixing + query emb.
  # TODO(synk): NonAutoRegression internals are not in the reference.
  ctx = ctx_ref[...]                                     # (P*N*S, F)
  h = tf_in + dot(ctx, w_ctx_ref[...]) + b_ctx_ref[...]  # (P*N*S, F)
  # tmix = kron(W_time[T,P], I_{N*S}) folds the per-(agent,sample) batched time
  # mixing and the (S,N,P)->(T,N,S) layout change into one MXU matmul.
  query = dot(tmix_ref[...], h) + qemb_ref[...]          # (T*N*S, F)

  # ---- noise_fc on the tiled latent z
  query = query + dot(z_ref[...], w_nz_ref[...]) + b_nz_ref[...]

  # ---- TimeSpaJointFutureDecoder stand-in: masked joint cross-attention + FFN
  # TODO(synk): TimeSpaJointFutureDecoder internals are not in the reference.
  q = dot(query, w_q_ref[...]) + b_q_ref[...]            # (T*N*S, F)
  k = dot(ctx, w_k_ref[...]) + b_k_ref[...]              # (P*N*S, F)
  v = dot(ctx, w_v_ref[...]) + b_v_ref[...]              # (P*N*S, F)
  logits = jax.lax.dot_general(q, k, (((1,), (1,)), ((), ())),
                               preferred_element_type=jnp.float32) * scale
  logits = logits + mask_ref[...]                        # -1e9 across samples
  logits = logits - jnp.max(logits, axis=-1, keepdims=True)
  p = jnp.exp(logits)
  p = p * pl.reciprocal(jnp.sum(p, axis=-1, keepdims=True), approx=True)
  attn = dot(p, v)                                       # (T*N*S, F)
  h2 = query + dot(attn, w_o_ref[...]) + b_o_ref[...]
  ff = jnp.maximum(dot(h2, w_f1_ref[...]) + b_f1_ref[...], 0.0)
  tf_out = h2 + dot(ff, w_f2_ref[...]) + b_f2_ref[...]

  # ---- out_fc + pred_type == 'scene_norm' residuals
  seq = dot(tf_out, w_out_ref[...]) + b_out_ref[...]     # (T*N*S, D)
  seq = seq + last_ref[...]                              # + pre_motion_scene_norm[-1]
  seq_ref[...] = seq
  dec_ref[...] = seq + orig_ref[...]                     # + scene_orig


# ----------------------------- FutureDecoder forward --------------------------
def future_decoder_forward(params, data, sample_num=S_SAMPLE):
  N = data['agent_num']
  S = sample_num
  F = F_FEAT
  T = T_FUT
  D = D_FORECAST
  f32 = jnp.float32

  # forward(): repeat_interleave(sample_num, dim=1)
  context_enc = data['context_enc'].astype(f32)                      # (P*N, 1, F)
  pre_motion = jnp.repeat(data['pre_motion'].astype(f32), S, axis=1)             # (P, N*S, D)
  pre_vel = jnp.repeat(data['pre_vel'].astype(f32), S, axis=1)
  pre_motion_scene_norm = jnp.repeat(data['pre_motion_scene_norm'].astype(f32), S, axis=1)
  context = jnp.repeat(context_enc, S, axis=1).reshape(-1, F)        # (P*N*S, F), rows (p,n,s)
  P = pre_motion.shape[0]

  # z_type == 'gaussian' -> z ~ N(0, I); deterministic sample provided in data.
  z = data['z'].astype(f32)                                          # (N*S, NZ)

  # ----- decode_traj_batch input assembly -----
  traj_in = []
  for key_name in INPUT_TYPE:
    if key_name == 'pos':
      traj_in.append(pre_motion)
    elif key_name == 'vel':
      vel = pre_vel
      if len(INPUT_TYPE) > 1:
        vel = jnp.concatenate([vel[:1], vel], axis=0)
      traj_in.append(vel)
    elif key_name == 'scene_norm':
      traj_in.append(pre_motion_scene_norm)
    else:
      raise ValueError('unknown input_type!')
  traj_in = jnp.concatenate(traj_in, axis=-1)                        # (P, N*S, in_dim)
  in_dim = traj_in.shape[-1]
  x_in = traj_in.reshape(P * N * S, in_dim)                          # rows (p,n,s)

  nq = T * N * S
  nk = P * N * S
  z_rep = jnp.tile(z, (T, 1))                                        # (T*N*S, NZ), rows (t,n,s)
  last_sn = jnp.tile(pre_motion_scene_norm[-1], (T, 1))              # (T*N*S, D)
  scene_orig = data['scene_orig'].astype(f32).reshape(1, D)

  # additive mask: query row s must match context row s (per-sample attention)
  sq = jnp.arange(nq) % S
  sk = jnp.arange(nk) % S
  attn_mask = jnp.where(sq[:, None] == sk[None, :], 0.0, -1e9).astype(f32)

  # QGB time-mixing folded with a per-(agent,sample) identity.
  tmix = jnp.kron(params['qgb_time_w'].astype(f32),
                  jnp.eye(N * S, dtype=f32))                         # (T*N*S, P*N*S)
  qemb = jnp.repeat(params['qgb_query_emb'].astype(f32), N * S, axis=0)  # (T*N*S, F)

  def wb(name):
    w, b = params[name]
    return w.astype(f32), b.astype(f32).reshape(1, -1)

  w_in, b_in = wb('input_fc')
  w_ctx, b_ctx = wb('qgb_ctx')
  w_nz, b_nz = wb('noise_fc')
  w_q, b_q = wb('dec_q')
  w_k, b_k = wb('dec_k')
  w_v, b_v = wb('dec_v')
  w_o, b_o = wb('dec_o')
  w_f1, b_f1 = wb('dec_ff1')
  w_f2, b_f2 = wb('dec_ff2')
  w_out, b_out = wb('out_fc')

  if PRED_TYPE != 'scene_norm':
    # TODO(synk): only the configured pred_type ('scene_norm') path is fused;
    # 'vel' (cumsum) / 'pos' branches are not implemented in the fused kernel.
    raise NotImplementedError("fused kernel implements pred_type == 'scene_norm'")

  kernel = functools.partial(_fused_future_decoder_kernel, scale=1.0 / math.sqrt(F))
  seq_flat, dec_flat = pl.pallas_call(
      kernel,
      out_shape=(jax.ShapeDtypeStruct((nq, D), f32),
                 jax.ShapeDtypeStruct((nq, D), f32)),
  )(x_in, context, z_rep, last_sn, scene_orig, attn_mask,
    w_in, b_in, w_ctx, b_ctx, tmix, qemb, w_nz, b_nz,
    w_q, b_q, w_k, b_k, w_v, b_v, w_o, b_o,
    w_f1, b_f1, w_f2, b_f2, w_out, b_out)

  # seq_out: (T, N*S, D); dec_motion: (N, S, T, D) -- tiny wrapper-side layout only.
  seq_out = seq_flat.reshape(T, N * S, D)
  dec_motion = dec_flat.reshape(T, N * S, D).transpose(1, 0, 2).reshape(N, S, T, D)

  out = dict(data)
  out['seq_out'] = seq_out
  out['dec_motion'] = dec_motion
  return out


# ----------------------------- parameters --------------------------------------
def _init_linear(key, din, dout, scale=0.1):
  kw, kb = jax.random.split(key)
  w = scale * jax.random.normal(kw, (din, dout), jnp.float32)
  b = scale * jax.random.normal(kb, (dout,), jnp.float32)
  return w, b


def init_params(key):
  ks = jax.random.split(key, 12)
  in_dim = len(INPUT_TYPE) * D_FORECAST
  params = {
      'input_fc': _init_linear(ks[0], in_dim, F_FEAT),
      'noise_fc': _init_linear(ks[1], NZ, F_FEAT),
      'out_fc':   _init_linear(ks[2], F_FEAT, D_FORECAST),
      # QGB (NonAutoRegression) stand-in params
      'qgb_ctx':  _init_linear(ks[3], F_FEAT, F_FEAT),
      'qgb_time_w': 0.1 * jax.random.normal(ks[4], (T_FUT, P_PAST), jnp.float32),
      'qgb_query_emb': 0.1 * jax.random.normal(ks[5], (T_FUT, F_FEAT), jnp.float32),
      # TimeSpaJointFutureDecoder stand-in params
      'dec_q': _init_linear(ks[6], F_FEAT, F_FEAT),
      'dec_k': _init_linear(ks[7], F_FEAT, F_FEAT),
      'dec_v': _init_linear(ks[8], F_FEAT, F_FEAT),
      'dec_o': _init_linear(ks[9], F_FEAT, F_FEAT),
      'dec_ff1': _init_linear(ks[10], F_FEAT, FFN_DIM),
      'dec_ff2': _init_linear(ks[11], FFN_DIM, F_FEAT),
  }
  # true_query_fc exists in __init__ but is never used in this forward path.
  return params


# ----------------------------- main ---------------------------------------------
if __name__ == "__main__":
  key = jax.random.PRNGKey(0)
  k_data, k_param, k_z = jax.random.split(key, 3)
  params = init_params(k_param)

  dk = jax.random.split(k_data, 4)
  scene_orig = jax.random.normal(dk[0], (D_FORECAST,), jnp.float32)
  pre_motion = jax.random.normal(dk[1], (P_PAST, N_AGENT, D_FORECAST), jnp.float32)
  data = {
      'agent_num': N_AGENT,
      'context_enc': jax.random.normal(dk[2], (P_PAST * N_AGENT, 1, F_FEAT), jnp.float32),
      'pre_motion': pre_motion,
      'pre_vel': pre_motion[1:] - pre_motion[:-1],
      'pre_motion_scene_norm': pre_motion - scene_orig,
      'scene_orig': scene_orig,
      # deterministic standard-normal sample for the gaussian latent z
      'z': jax.random.normal(k_z, (N_AGENT * S_SAMPLE, NZ), jnp.float32),
  }

  out = future_decoder_forward(params, data, sample_num=S_SAMPLE)
  jax.block_until_ready(out['dec_motion'])

  assert out['seq_out'].shape == (T_FUT, N_AGENT * S_SAMPLE, D_FORECAST)
  assert out['dec_motion'].shape == (N_AGENT, S_SAMPLE, T_FUT, D_FORECAST)
  assert bool(jnp.all(jnp.isfinite(out['dec_motion'])))
  assert bool(jnp.all(jnp.isfinite(out['seq_out'])))
  print("KERNEL_OK")
</pallas_src>

<mosaic_0001>
module attributes {stable_mosaic.version = 11 : i64} {
  func.func @_fused_future_decoder_kernel(%arg0: memref<24x2xf32, #tpu.memory_space<vmem>>, %arg1: memref<24x32xf32, #tpu.memory_space<vmem>>, %arg2: memref<30x16xf32, #tpu.memory_space<vmem>>, %arg3: memref<30x2xf32, #tpu.memory_space<vmem>>, %arg4: memref<1x2xf32, #tpu.memory_space<vmem>>, %arg5: memref<30x24xf32, #tpu.memory_space<vmem>>, %arg6: memref<2x32xf32, #tpu.memory_space<vmem>>, %arg7: memref<1x32xf32, #tpu.memory_space<vmem>>, %arg8: memref<32x32xf32, #tpu.memory_space<vmem>>, %arg9: memref<1x32xf32, #tpu.memory_space<vmem>>, %arg10: memref<30x24xf32, #tpu.memory_space<vmem>>, %arg11: memref<30x32xf32, #tpu.memory_space<vmem>>, %arg12: memref<16x32xf32, #tpu.memory_space<vmem>>, %arg13: memref<1x32xf32, #tpu.memory_space<vmem>>, %arg14: memref<32x32xf32, #tpu.memory_space<vmem>>, %arg15: memref<1x32xf32, #tpu.memory_space<vmem>>, %arg16: memref<32x32xf32, #tpu.memory_space<vmem>>, %arg17: memref<1x32xf32, #tpu.memory_space<vmem>>, %arg18: memref<32x32xf32, #tpu.memory_space<vmem>>, %arg19: memref<1x32xf32, #tpu.memory_space<vmem>>, %arg20: memref<32x32xf32, #tpu.memory_space<vmem>>, %arg21: memref<1x32xf32, #tpu.memory_space<vmem>>, %arg22: memref<32x64xf32, #tpu.memory_space<vmem>>, %arg23: memref<1x64xf32, #tpu.memory_space<vmem>>, %arg24: memref<64x32xf32, #tpu.memory_space<vmem>>, %arg25: memref<1x32xf32, #tpu.memory_space<vmem>>, %arg26: memref<32x2xf32, #tpu.memory_space<vmem>>, %arg27: memref<1x2xf32, #tpu.memory_space<vmem>>, %arg28: memref<30x2xf32, #tpu.memory_space<vmem>>, %arg29: memref<30x2xf32, #tpu.memory_space<vmem>>) attributes {dimension_semantics = [], scalar_prefetch = 0 : i64, scratch_operands = 0 : i64, tpu.core_type = #tpu.core_type<tc>} {
    %c0 = arith.constant 0 : index
    %c0_0 = arith.constant 0 : index
    %0 = vector.load %arg0[%c0, %c0_0] : memref<24x2xf32, #tpu.memory_space<vmem>>, vector<24x2xf32>
    %c0_1 = arith.constant 0 : index
    %c0_2 = arith.constant 0 : index
    %1 = vector.load %arg6[%c0_1, %c0_2] : memref<2x32xf32, #tpu.memory_space<vmem>>, vector<2x32xf32>
    %cst = arith.constant dense<0.000000e+00> : vector<24x32xf32>
    %2 = tpu.matmul %0, %1, %cst {dimension_numbers = #tpu.dot_dimension_numbers<[1], [0], [0], [1], [0, 0, 1, 1], [], []>} : vector<24x2xf32>, vector<2x32xf32>, vector<24x32xf32> -> vector<24x32xf32>
    %c0_3 = arith.constant 0 : index
    %c0_4 = arith.constant 0 : index
    %3 = vector.load %arg7[%c0_3, %c0_4] : memref<1x32xf32, #tpu.memory_space<vmem>>, vector<1x32xf32>
    %4 = vector.broadcast %3 : vector<1x32xf32> to vector<24x32xf32>
    %5 = arith.addf %2, %4 : vector<24x32xf32>
    %c0_5 = arith.constant 0 : index
    %c0_6 = arith.constant 0 : index
    %6 = vector.load %arg1[%c0_5, %c0_6] : memref<24x32xf32, #tpu.memory_space<vmem>>, vector<24x32xf32>
    %c0_7 = arith.constant 0 : index
    %c0_8 = arith.constant 0 : index
    %7 = vector.load %arg8[%c0_7, %c0_8] : memref<32x32xf32, #tpu.memory_space<vmem>>, vector<32x32xf32>
    %cst_9 = arith.constant dense<0.000000e+00> : vector<24x32xf32>
    %8 = tpu.matmul %6, %7, %cst_9 {dimension_numbers = #tpu.dot_dimension_numbers<[1], [0], [0], [1], [0, 0, 1, 1], [], []>} : vector<24x32xf32>, vector<32x32xf32>, vector<24x32xf32> -> vector<24x32xf32>
    %9 = arith.addf %5, %8 : vector<24x32xf32>
    %c0_10 = arith.constant 0 : index
    %c0_11 = arith.constant 0 : index
    %10 = vector.load %arg9[%c0_10, %c0_11] : memref<1x32xf32, #tpu.memory_space<vmem>>, vector<1x32xf32>
    %11 = vector.broadcast %10 : vector<1x32xf32> to vector<24x32xf32>
    %12 = arith.addf %9, %11 : vector<24x32xf32>
    %c0_12 = arith.constant 0 : index
    %c0_13 = arith.constant 0 : index
    %13 = vector.load %arg10[%c0_12, %c0_13] : memref<30x24xf32, #tpu.memory_space<vmem>>, vector<30x24xf32>
    %cst_14 = arith.constant dense<0.000000e+00> : vector<30x32xf32>
    %14 = tpu.matmul %13, %12, %cst_14 {dimension_numbers = #tpu.dot_dimension_numbers<[1], [0], [0], [1], [0, 0, 1, 1], [], []>} : vector<30x24xf32>, vector<24x32xf32>, vector<30x32xf32> -> vector<30x32xf32>
    %c0_15 = arith.constant 0 : index
    %c0_16 = arith.constant 0 : index
    %15 = vector.load %arg11[%c0_15, %c0_16] : memref<30x32xf32, #tpu.memory_space<vmem>>, vector<30x32xf32>
    %16 = arith.addf %14, %15 : vector<30x32xf32>
    %c0_17 = arith.constant 0 : index
    %c0_18 = arith.constant 0 : index
    %17 = vector.load %arg2[%c0_17, %c0_18] : memref<30x16xf32, #tpu.memory_space<vmem>>, vector<30x16xf32>
    %c0_19 = arith.constant 0 : index
    %c0_20 = arith.constant 0 : index
    %18 = vector.load %arg12[%c0_19, %c0_20] : memref<16x32xf32, #tpu.memory_space<vmem>>, vector<16x32xf32>
    %cst_21 = arith.constant dense<0.000000e+00> : vector<30x32xf32>
    %19 = tpu.matmul %17, %18, %cst_21 {dimension_numbers = #tpu.dot_dimension_numbers<[1], [0], [0], [1], [0, 0, 1, 1], [], []>} : vector<30x16xf32>, vector<16x32xf32>, vector<30x32xf32> -> vector<30x32xf32>
    %20 = arith.addf %16, %19 : vector<30x32xf32>
    %c0_22 = arith.constant 0 : index
    %c0_23 = arith.constant 0 : index
    %21 = vector.load %arg13[%c0_22, %c0_23] : memref<1x32xf32, #tpu.memory_space<vmem>>, vector<1x32xf32>
    %22 = vector.broadcast %21 : vector<1x32xf32> to vector<30x32xf32>
    %23 = arith.addf %20, %22 : vector<30x32xf32>
    %c0_24 = arith.constant 0 : index
    %c0_25 = arith.constant 0 : index
    %24 = vector.load %arg14[%c0_24, %c0_25] : memref<32x32xf32, #tpu.memory_space<vmem>>, vector<32x32xf32>
    %cst_26 = arith.constant dense<0.000000e+00> : vector<30x32xf32>
    %25 = tpu.matmul %23, %24, %cst_26 {dimension_numbers = #tpu.dot_dimension_numbers<[1], [0], [0], [1], [0, 0, 1, 1], [], []>} : vector<30x32xf32>, vector<32x32xf32>, vector<30x32xf32> -> vector<30x32xf32>
    %c0_27 = arith.constant 0 : index
    %c0_28 = arith.constant 0 : index
    %26 = vector.load %arg15[%c0_27, %c0_28] : memref<1x32xf32, #tpu.memory_space<vmem>>, vector<1x32xf32>
    %27 = vector.broadcast %26 : vector<1x32xf32> to vector<30x32xf32>
    %28 = arith.addf %25, %27 : vector<30x32xf32>
    %c0_29 = arith.constant 0 : index
    %c0_30 = arith.constant 0 : index
    %29 = vector.load %arg16[%c0_29, %c0_30] : memref<32x32xf32, #tpu.memory_space<vmem>>, vector<32x32xf32>
    %cst_31 = arith.constant dense<0.000000e+00> : vector<24x32xf32>
    %30 = tpu.matmul %6, %29, %cst_31 {dimension_numbers = #tpu.dot_dimension_numbers<[1], [0], [0], [1], [0, 0, 1, 1], [], []>} : vector<24x32xf32>, vector<32x32xf32>, vector<24x32xf32> -> vector<24x32xf32>
    %c0_32 = arith.constant 0 : index
    %c0_33 = arith.constant 0 : index
    %31 = vector.load %arg17[%c0_32, %c0_33] : memref<1x32xf32, #tpu.memory_space<vmem>>, vector<1x32xf32>
    %32 = vector.broadcast %31 : vector<1x32xf32> to vector<24x32xf32>
    %33 = arith.addf %30, %32 : vector<24x32xf32>
    %c0_34 = arith.constant 0 : index
    %c0_35 = arith.constant 0 : index
    %34 = vector.load %arg18[%c0_34, %c0_35] : memref<32x32xf32, #tpu.memory_space<vmem>>, vector<32x32xf32>
    %cst_36 = arith.constant dense<0.000000e+00> : vector<24x32xf32>
    %35 = tpu.matmul %6, %34, %cst_36 {dimension_numbers = #tpu.dot_dimension_numbers<[1], [0], [0], [1], [0, 0, 1, 1], [], []>} : vector<24x32xf32>, vector<32x32xf32>, vector<24x32xf32> -> vector<24x32xf32>
    %c0_37 = arith.constant 0 : index
    %c0_38 = arith.constant 0 : index
    %36 = vector.load %arg19[%c0_37, %c0_38] : memref<1x32xf32, #tpu.memory_space<vmem>>, vector<1x32xf32>
    %37 = vector.broadcast %36 : vector<1x32xf32> to vector<24x32xf32>
    %38 = arith.addf %35, %37 : vector<24x32xf32>
    %cst_39 = arith.constant dense<0.000000e+00> : vector<30x24xf32>
    %39 = tpu.matmul %28, %33, %cst_39 {dimension_numbers = #tpu.dot_dimension_numbers<[1], [1], [0], [0], [0, 0, 1, 0], [], []>} : vector<30x32xf32>, vector<24x32xf32>, vector<30x24xf32> -> vector<30x24xf32>
    %cst_40 = arith.constant 0.176776692 : f32
    %40 = vector.broadcast %cst_40 : f32 to vector<30x24xf32>
    %41 = arith.mulf %39, %40 : vector<30x24xf32>
    %c0_41 = arith.constant 0 : index
    %c0_42 = arith.constant 0 : index
    %42 = vector.load %arg5[%c0_41, %c0_42] : memref<30x24xf32, #tpu.memory_space<vmem>>, vector<30x24xf32>
    %43 = arith.addf %41, %42 : vector<30x24xf32>
    %cst_43 = arith.constant dense<0xFF800000> : vector<30xf32>
    %44 = vector.multi_reduction <maximumf>, %43, %cst_43 [1] : vector<30x24xf32> to vector<30xf32>
    %45 = vector.shape_cast %44 : vector<30xf32> to vector<30x1xf32>
    %46 = vector.broadcast %45 : vector<30x1xf32> to vector<30x24xf32>
    %47 = arith.subf %43, %46 : vector<30x24xf32>
    %48 = math.exp %47 : vector<30x24xf32>
    %cst_44 = arith.constant dense<0.000000e+00> : vector<30xf32>
    %49 = vector.multi_reduction <add>, %48, %cst_44 [1] : vector<30x24xf32> to vector<30xf32>
    %50 = vector.shape_cast %49 : vector<30xf32> to vector<30x1xf32>
    %51 = tpu.reciprocal %50 {approx = true} : vector<30x1xf32> -> vector<30x1xf32>
    %52 = vector.broadcast %51 : vector<30x1xf32> to vector<30x24xf32>
    %53 = arith.mulf %48, %52 : vector<30x24xf32>
    %cst_45 = arith.constant dense<0.000000e+00> : vector<30x32xf32>
    %54 = tpu.matmul %53, %38, %cst_45 {dimension_numbers = #tpu.dot_dimension_numbers<[1], [0], [0], [1], [0, 0, 1, 1], [], []>} : vector<30x24xf32>, vector<24x32xf32>, vector<30x32xf32> -> vector<30x32xf32>
    %c0_46 = arith.constant 0 : index
    %c0_47 = arith.constant 0 : index
    %55 = vector.load %arg20[%c0_46, %c0_47] : memref<32x32xf32, #tpu.memory_space<vmem>>, vector<32x32xf32>
    %cst_48 = arith.constant dense<0.000000e+00> : vector<30x32xf32>
    %56 = tpu.matmul %54, %55, %cst_48 {dimension_numbers = #tpu.dot_dimension_numbers<[1], [0], [0], [1], [0, 0, 1, 1], [], []>} : vector<30x32xf32>, vector<32x32xf32>, vector<30x32xf32> -> vector<30x32xf32>
    %57 = arith.addf %23, %56 : vector<30x32xf32>
    %c0_49 = arith.constant 0 : index
    %c0_50 = arith.constant 0 : index
    %58 = vector.load %arg21[%c0_49, %c0_50] : memref<1x32xf32, #tpu.memory_space<vmem>>, vector<1x32xf32>
    %59 = vector.broadcast %58 : vector<1x32xf32> to vector<30x32xf32>
    %60 = arith.addf %57, %59 : vector<30x32xf32>
    %c0_51 = arith.constant 0 : index
    %c0_52 = arith.constant 0 : index
    %61 = vector.load %arg22[%c0_51, %c0_52] : memref<32x64xf32, #tpu.memory_space<vmem>>, vector<32x64xf32>
    %cst_53 = arith.constant dense<0.000000e+00> : vector<30x64xf32>
    %62 = tpu.matmul %60, %61, %cst_53 {dimension_numbers = #tpu.dot_dimension_numbers<[1], [0], [0], [1], [0, 0, 1, 1], [], []>} : vector<30x32xf32>, vector<32x64xf32>, vector<30x64xf32> -> vector<30x64xf32>
    %c0_54 = arith.constant 0 : index
    %c0_55 = arith.constant 0 : index
    %63 = vector.load %arg23[%c0_54, %c0_55] : memref<1x64xf32, #tpu.memory_space<vmem>>, vector<1x64xf32>
    %64 = vector.broadcast %63 : vector<1x64xf32> to vector<30x64xf32>
    %65 = arith.addf %62, %64 : vector<30x64xf32>
    %cst_56 = arith.constant 0.000000e+00 : f32
    %66 = vector.broadcast %cst_56 : f32 to vector<30x64xf32>
    %67 = arith.maximumf %65, %66 : vector<30x64xf32>
    %c0_57 = arith.constant 0 : index
    %c0_58 = arith.constant 0 : index
    %68 = vector.load %arg24[%c0_57, %c0_58] : memref<64x32xf32, #tpu.memory_space<vmem>>, vector<64x32xf32>
    %cst_59 = arith.constant dense<0.000000e+00> : vector<30x32xf32>
    %69 = tpu.matmul %67, %68, %cst_59 {dimension_numbers = #tpu.dot_dimension_numbers<[1], [0], [0], [1], [0, 0, 1, 1], [], []>} : vector<30x64xf32>, vector<64x32xf32>, vector<30x32xf32> -> vector<30x32xf32>
    %70 = arith.addf %60, %69 : vector<30x32xf32>
    %c0_60 = arith.constant 0 : index
    %c0_61 = arith.constant 0 : index
    %71 = vector.load %arg25[%c0_60, %c0_61] : memref<1x32xf32, #tpu.memory_space<vmem>>, vector<1x32xf32>
    %72 = vector.broadcast %71 : vector<1x32xf32> to vector<30x32xf32>
    %73 = arith.addf %70, %72 : vector<30x32xf32>
    %c0_62 = arith.constant 0 : index
    %c0_63 = arith.constant 0 : index
    %74 = vector.load %arg26[%c0_62, %c0_63] : memref<32x2xf32, #tpu.memory_space<vmem>>, vector<32x2xf32>
    %cst_64 = arith.constant dense<0.000000e+00> : vector<30x2xf32>
    %75 = tpu.matmul %73, %74, %cst_64 {dimension_numbers = #tpu.dot_dimension_numbers<[1], [0], [0], [1], [0, 0, 1, 1], [], []>} : vector<30x32xf32>, vector<32x2xf32>, vector<30x2xf32> -> vector<30x2xf32>
    %c0_65 = arith.constant 0 : index
    %c0_66 = arith.constant 0 : index
    %76 = vector.load %arg27[%c0_65, %c0_66] : memref<1x2xf32, #tpu.memory_space<vmem>>, vector<1x2xf32>
    %77 = vector.broadcast %76 : vector<1x2xf32> to vector<30x2xf32>
    %78 = arith.addf %75, %77 : vector<30x2xf32>
    %c0_67 = arith.constant 0 : index
    %c0_68 = arith.constant 0 : index
    %79 = vector.load %arg3[%c0_67, %c0_68] : memref<30x2xf32, #tpu.memory_space<vmem>>, vector<30x2xf32>
    %80 = arith.addf %78, %79 : vector<30x2xf32>
    %c0_69 = arith.constant 0 : index
    %c0_70 = arith.constant 0 : index
    %81 = vector.load %arg28[%c0_69, %c0_70] : memref<30x2xf32, #tpu.memory_space<vmem>>, vector<30x2xf32>
    tpu.vector_store %arg28[%c0_69, %c0_70], %80 {strides = array<i32>} : memref<30x2xf32, #tpu.memory_space<vmem>>, vector<30x2xf32>,
    %c0_71 = arith.constant 0 : index
    %c0_72 = arith.constant 0 : index
    %82 = vector.load %arg4[%c0_71, %c0_72] : memref<1x2xf32, #tpu.memory_space<vmem>>, vector<1x2xf32>
    %83 = vector.broadcast %82 : vector<1x2xf32> to vector<30x2xf32>
    %84 = arith.addf %80, %83 : vector<30x2xf32>
    %c0_73 = arith.constant 0 : index
    %c0_74 = arith.constant 0 : index
    %85 = vector.load %arg29[%c0_73, %c0_74] : memref<30x2xf32, #tpu.memory_space<vmem>>, vector<30x2xf32>
    tpu.vector_store %arg29[%c0_73, %c0_74], %84 {strides = array<i32>} : memref<30x2xf32, #tpu.memory_space<vmem>>, vector<30x2xf32>,
    return
  }
}

</mosaic_0001>

<bundles_post_ra>
// kernel: tpu_custom_call.1
= control target key start
LH: loop header
LB: loop body
LE: loop exit
PB: predicated region body
PF: predicated region fallthrough
CT: control target
= control target key end

     0   :  { %v2118_v0 = vmov 0.0|0.0   ;;  %s2119_s3 = smov 8   ;;  %v2120_v1 = vmov 0.0   ;;  %s2121_s7 = smov 6   ;;  %vm2122_vm0 = vmmov 0   ;;  %vm142_vm1 = vcmask 1041408   ;;  %s2387_s0 = inlined_call_operand.smem [shape: u32[30], index: -1, kind: input, shape index: {}] }
   0x1   :  { %1978 = vmatprep.subr.bf16.mxu1 %v2118_v0  ;;  %s1611_s6 = sld [smem:[%s2387_s0 + %s2119_s3]]   ;;  %1792 = vmatprep.subr.mxu0 %v2120_v1  ;;  %vm132_vm2 = vcmask 15360   ;;  %s2123_s14 = smov 1   ;;  %vm233_vm3 = vcmask 261120   ;;  %vm344_vm4 = vcmask 195584   ;;  %vm448_vm5 = vcmask 130048  }
   0x2   :  { %s1609_s10 = sld [smem:[%s2387_s0 + %s2121_s7]]   ;;  %1794 = vmatprep.mubr.msk.f32.mxu0 %vm2122_vm0, %v2120_v1  ;;  %1811 = vmatprep.mubr.msk.f32.mxu1 %vm2122_vm0, %v2120_v1  ;;  %s2124_s18 = smov 10   ;;  %vm2013_vm6 = vmpackc.low %vm233_vm3, %vm233_vm3  ;;  %vm978_vm7 = vcmask 193536   ;;  %vm1347_vm8 = vcmask 523264   ;;  %vm1579_vm9 = vcmask 13312  }
   0x3   :  { %s1_s13 = sld [smem:[%s2387_s0]]   ;;  %s2125_s22 = smov 14  }
   0x4   :  { %s1604_s17 = sld [smem:[%s2387_s0 + %s2123_s14]]   ;;  %s2126_s26 = smov 7  }
   0x5   :  { %s2200_s21 = sld [smem:[%s2387_s0 + %s2124_s18]]   ;;  %s2127_s30 = smov 9  }
   0x6   :  { %s2207_s25 = sld [smem:[%s2387_s0 + %s2125_s22]]   ;;  %s2128_s4 = smov 12  }
   0x7   :  { %v229_v2 = vld [vmem:[%s1611_s6] sm:$0xff]  ;;  %v230_v3 = vld [vmem:[%s1611_s6 + $0x8] sm:$0xff]  ;;  %v231_v7 = vld [vmem:[%s1611_s6 + $0x10] sm:$0xff]  ;;  %s1610_s29 = sld [smem:[%s2387_s0 + %s2126_s26]]   ;;  %s2129_s8 = smov 2  }
   0x8   :  { %v124_v4 = vld [vmem:[%s1609_s10] sm:$0x3]  ;;  %v1979_v5 = vpack.c.bf16 %v230_v3, %v229_v2  ;;  %v232_v8 = vld [vmem:[%s1611_s6 + $0x18] sm:$0xff]  ;;  %s1612_s3 = sld [smem:[%s2387_s0 + %s2127_s30]]   ;;  %s2130_s12 = smov 11  }
   0x9   :  { %1793 = vmatpush3.msk.msra.mxu0 %vm142_vm1, %v124_v4  ;;  %v121_v6 = vld [vmem:[%s1_s13] sm:$0xff]  ;;  %v1982_v9 = vpack.c.bf16 %v232_v8, %v231_v7  ;;  %v122_v10 = vld [vmem:[%s1_s13 + $0x8] sm:$0xff]  ;;  %v123_v12 = vld [vmem:[%s1_s13 + $0x10] sm:$0xff]  ;;  %s1615_s7 = sld [smem:[%s2387_s0 + %s2128_s4]]   ;;  %s2131_s16 = smov 13  }
   0xa   :  { %1795 = vmatmul.mubr.msk.f32.vlgmr.msra.gmra.mrb[0].mxu0 %vm132_vm2, %v121_v6  ;;  %1980 = vmatpush3.bf16.msra.mxu1 %v1979_v5  ;;  %v2178_v11 = vld [vmem:[%s1604_s17] sm:$0xff]  ;;  %v2187_v13 = vld [vmem:[%s1604_s17 + $0x8] sm:$0xff]  ;;  %v2193_v14 = vld [vmem:[%s1604_s17 + $0x10] sm:$0xff]  ;;  %s1605_s11 = sld [smem:[%s2387_s0 + %s2129_s8]]   ;;  %s2132_s20 = smov 16  }
   0xb   :  { %1797 = vmatprep.mubr.msk.f32.mxu0 %vm2122_vm0, %v2120_v1  ;;  %1981 = vmatprep.subr.bf16.mxu1 %v2118_v0  ;;  %v336_v15 = vld [vmem:[%s2200_s21] sm:$0xff]  ;;  %v337_v46 = vld [vmem:[%s2200_s21 + $0x8] sm:$0xff]  ;;  %v338_v47 = vld [vmem:[%s2200_s21 + $0x10] sm:$0xff]  ;;  %s1614_s15 = sld [smem:[%s2387_s0 + %s2130_s12]]   ;;  %s2133_s24 = smov 15  }
   0xc   :  { %v561_v16 = vld [vmem:[%s2207_s25] sm:$0xff]  ;;  %v562_v17 = vld [vmem:[%s2207_s25 + $0x8] sm:$0xff]  ;;  %v339_v48 = vld [vmem:[%s2200_s21 + $0x18] sm:$0x3f]  ;;  %s1616_s19 = sld [smem:[%s2387_s0 + %s2131_s16]]   ;;  %s2134_s28 = smov 17  }
   0xd   :  { %v1992_v18 = vpack.c.bf16 %v562_v17, %v561_v16  ;;  %v1633_v21 = vld [vmem:[%s1610_s29] ss:$0 sm:$0xff]  ;;  %v563_v53 = vld [vmem:[%s2207_s25 + $0x10] sm:$0xff]  ;;  %v564_v54 = vld [vmem:[%s2207_s25 + $0x18] sm:$0xff]  ;;  %s1619_s23 = sld [smem:[%s2387_s0 + %s2132_s20]]   ;;  %s2135_s2 = smov 18  }
   0xe   :  { %1798 = vmatmul.mubr.msk.f32.gmra.mrb[2].mxu0 %vm132_vm2, %v122_v10  ;;  %1983 = vmatpush3.bf16.msra.mxu1 %v1982_v9  ;;  %v1641_v31 = vld [vmem:[%s1612_s3] ss:$0 sm:$0xff]  ;;  %v1996_v55 = vpack.c.bf16 %v564_v54, %v563_v53  ;;  %s1618_s27 = sld [smem:[%s2387_s0 + %s2133_s24]]   ;;  %s2136_s6 = smov 5  }
   0xf   :  { %1800 = vmatprep.mubr.msk.f32.mxu0 %vm2122_vm0, %v2120_v1  ;;  %1993 = vmatprep.subr.bf16.mxu1 %v1992_v18  ;;  %v446_v42 = vld [vmem:[%s1615_s7] sm:$0xff]  ;;  %v447_v43 = vld [vmem:[%s1615_s7 + $0x8] sm:$0xff]  ;;  %s1620_s1 = sld [smem:[%s2387_s0 + %s2134_s28]]   ;;  %s2137_s10 = smov 19  }
  0x10   :  { %v1988_v45 = vpack.c.bf16 %v447_v43, %v446_v42  ;;  %v442_v49 = vld [vmem:[%s1605_s11] sm:$0xff]  ;;  %v443_v50 = vld [vmem:[%s1605_s11 + $0x8] sm:$0xff]  ;;  %v444_v51 = vld [vmem:[%s1605_s11 + $0x10] sm:$0xff]  ;;  %s1621_s5 = sld [smem:[%s2387_s0 + %s2135_s2]]   ;;  %s2138_s14 = smov 20  }
  0x11   :  { %1812 = vmatmul.mubr.msk.f32.vlgmr.msra.gmra.mrb[0].mxu1 %vm233_vm3, %v2178_v11  ;;  %v445_v52 = vld [vmem:[%s1605_s11 + $0x18] sm:$0x3f]  ;;  %v341_v56 = vld [vmem:[%s1614_s15 + $0x8] sm:$0xff]  ;;  %v340_v57 = vld [vmem:[%s1614_s15] sm:$0xff]  ;;  %s1608_s9 = sld [smem:[%s2387_s0 + %s2136_s6]]   ;;  %s2139_s18 = smov 22  }
  0x12   :  { %1801 = vmatmul.mubr.msk.f32.gmra.mrb[4].mxu0 %vm132_vm2, %v123_v12  ;;  %1814 = vmatprep.mubr.msk.f32.mxu1 %vm2122_vm0, %v2120_v1  ;;  %v1650_v60 = vld [vmem:[%s1616_s19] ss:$0 sm:$0xff]  ;;  %v343_v3 = vld [vmem:[%s1614_s15 + $0x18] sm:$0x3f]  ;;  %v342_v4 = vld [vmem:[%s1614_s15 + $0x10] sm:$0xff]  ;;  %s1622_s13 = sld [smem:[%s2387_s0 + %s2137_s10]]   ;;  %s2140_s22 = smov 24  }
  0x13   :  { %1826 = vmatprep.mubr.msk.f32.mxu0 %vm344_vm4, %v336_v15  ;;  %1995 = vmatpush3.bf16.msra.mxu1 %v1992_v18  ;;  %v669_v62 = vld [vmem:[%s1619_s23] sm:$0xff]  ;;  %v670_v63 = vld [vmem:[%s1619_s23 + $0x8] sm:$0xff]  ;;  %v671_v12 = vld [vmem:[%s1619_s23 + $0x10] sm:$0xff]  ;;  %s1623_s17 = sld [smem:[%s2387_s0 + %s2138_s14]]   ;;  %s2141_s26 = smov 21  }
  0x14   :  { %1997 = vmatprep.subr.bf16.mxu1 %v1996_v55  ;;  %v2001_v7 = vpack.c.bf16 %v670_v63, %v669_v62  ;;  %v672_v15 = vld [vmem:[%s1619_s23 + $0x18] sm:$0xff]  ;;  %s1625_s21 = sld [smem:[%s2387_s0 + %s2139_s18]]   ;;  %s2142_s30 = smov 26  }
  0x15   :  { %1815 = vmatmul.mubr.msk.f32.gmra.mrb[2].mxu1 %vm233_vm3, %v2187_v13  ;;  %v2004_v18 = vpack.c.bf16 %v672_v15, %v671_v12  ;;  %s2332_s25 = sld [smem:[%s2387_s0 + %s2140_s22]]   ;;  %s2143_s4 = smov 23  }
  0x16   :  { %1817 = vmatprep.mubr.msk.f32.mxu1 %vm2122_vm0, %v2120_v1  ;;  %v762_v42 = vld [vmem:[%s1621_s5 + $0x10] sm:$0xff]  ;;  %s1624_s29 = sld [smem:[%s2387_s0 + %s2141_s26]]   ;;  %s2144_s8 = smov 25  }
  0x17   :  { %1999 = vmatpush3.bf16.msra.mxu1 %v1996_v55  ;;  %v964_v55 = vld [vmem:[%s1608_s9 + $0x18] sm:$0x3f]  ;;  %s1629_s3 = sld [smem:[%s2387_s0 + %s2142_s30]]   ;;  %s2145_s12 = smov 27  }
  0x18   :  { %2000 = vmatprep.subr.bf16.mxu1 %v2118_v0  ;;  %s1626_s7 = sld [smem:[%s2387_s0 + %s2143_s4]]   ;;  %s2146_s16 = smov 3  }
  0x19   :  { %1818 = vmatmul.mubr.msk.f32.gmra.mrb[4].mxu1 %vm233_vm3, %v2193_v14  ;;  %s1628_s11 = sld [smem:[%s2387_s0 + %s2144_s8]]   ;;  %s2147_s20 = smov 4  }
  0x1a   :  { %s1630_s15 = sld [smem:[%s2387_s0 + %s2145_s12]]   ;;  %s2148_s24 = smov 28  }
  0x1b   :  { %s1606_s19 = sld [smem:[%s2387_s0 + %s2146_s16]]   ;;  %s2149_s28 = smov 29  }
  0x1c   :  { %s1607_s23 = sld [smem:[%s2387_s0 + %s2147_s20]]  }
  0xdd   :  { %v212_v19 = vpop.f32.mrb[0].mxu0 }
  0xde   :  { %v1796_v20 = vpop.f32.mrb[1].mxu0  ;;  %v213_v23 = vadd.f32 %v1633_v21, %v212_v19 }
  0xdf   :  { %v1651_v20 = vld [vmem:[%s1618_s27] ss:$0 sm:$0xff]  ;;  %s1631_s27 = sld [smem:[%s2387_s0 + %s2148_s24]]  }
  0xe1   :  { %v217_v22 = vpop.f32.mrb[2].mxu0 }
  0xe2   :  { %v1799_v24 = vpop.f32.mrb[3].mxu0  ;;  %v218_v28 = vadd.f32 %v1633_v21, %v217_v22 }
  0xe4   :  { %v309_v25 = vpop.f32.mrb[0].mxu1 }
  0xe5   :  { %v222_v26 = vpop.f32.mrb[4].mxu0  ;;  %v323_v27 = vadd.f32 %v309_v25, %v213_v23  ;;  %v1813_v29 = vpop.f32.mrb[1].mxu1 }
  0xe6   :  { %v1802_v30 = vpop.f32.mrb[5].mxu0  ;;  %v223_v35 = vadd.f32 %v1633_v21, %v222_v26 }
  0xe7   :  { %v333_v36 = vadd.f32 %v1641_v31, %v323_v27 }
  0xe8   :  { %v314_v32 = vpop.f32.mrb[2].mxu1 }
  0xe9   :  { %v324_v33 = vadd.f32 %v314_v32, %v218_v28  ;;  %v1816_v34 = vpop.f32.mrb[3].mxu1  ;;  %v1656_v28 = vld [vmem:[%s1620_s1] ss:$0 sm:$0xff]  ;;  %s1632_s1 = sld [smem:[%s2387_s0 + %s2149_s28]]  }
  0xeb   :  { %v334_v37 = vadd.f32 %v1641_v31, %v324_v33 }
  0xec   :  { %v319_v38 = vpop.f32.mrb[4].mxu1 }
  0xed   :  { %v325_v39 = vadd.f32 %v319_v38, %v223_v35  ;;  %v1984_v40 = vpack.c.bf16 %v334_v37, %v333_v36  ;;  %v1819_v41 = vpop.f32.mrb[5].mxu1 }
  0xee   :  { %v761_v41 = vld [vmem:[%s1621_s5 + $0x8] sm:$0xff] }
  0xef   :  { %v335_v44 = vadd.f32 %v1641_v31, %v325_v39  ;;  %1985 = vmatprep.subr.bf16.mxu0 %v1984_v40 }
  0xf0   :  { %1987 = vmatpush3.bf16.msra.mxu0 %v1984_v40  ;;  %v760_v40 = vld [vmem:[%s1621_s5] sm:$0xff] }
  0xf1   :  { %1824 = vmatprep.subr.mxu0 %v335_v44  ;;  %v2007_v43 = vpack.c.bf16 %v761_v41, %v760_v40  ;;  %v1114_v41 = vld [vmem:[%s1623_s17 + $0x18] sm:$0xff] }
  0xf4   :  { %1825 = vmatpush3.msra.mxu0 %v335_v44  ;;  %v763_v44 = vld [vmem:[%s1621_s5 + $0x18] sm:$0xff] }
  0xf5   :  { %1827 = vmatmul.mubr.msk.f32.vlgmr.msra.gmra.mrb[6].mxu0 %vm344_vm4, %v337_v46  ;;  %1989 = vmatprep.subr.bf16.mxu0 %v1988_v45 }
  0xf6   :  { %1829 = vmatprep.mubr.msk.f32.mxu0 %vm344_vm4, %v338_v47  ;;  %1991 = vmatpush3.bf16.msra.mxu0 %v1988_v45  ;;  %v2010_v45 = vpack.c.bf16 %v763_v44, %v762_v42 }
  0xf7   :  { %2006 = vmatprep.subr.bf16.mxu0 %v2118_v0 }
  0xf9   :  { %1830 = vmatmul.mubr.msk.f32.gmra.mrb[8].mxu0 %vm344_vm4, %v339_v48 }
  0xfa   :  { %1836 = vmatprep.mubr.msk.f32.mxu0 %vm448_vm5, %v442_v49  ;;  %v962_v49 = vld [vmem:[%s1608_s9 + $0x8] sm:$0xff] }
  0xfd   :  { %1837 = vmatmul.mubr.msk.f32.vlgmr.msra.gmra.mrb[6].mxu0 %vm448_vm5, %v443_v50 }
  0xfe   :  { %1839 = vmatprep.mubr.msk.f32.mxu0 %vm448_vm5, %v444_v51  ;;  %2008 = vmatpush3.bf16.msra.mxu0 %v2007_v43 }
  0xff   :  { %2009 = vmatprep.subr.bf16.mxu0 %v2118_v0 }
 0x101   :  { %1840 = vmatmul.mubr.msk.f32.gmra.mrb[8].mxu0 %vm448_vm5, %v445_v52  ;;  %v963_v52 = vld [vmem:[%s1608_s9 + $0x10] sm:$0xff] }
 0x102   :  { %1881 = vmatprep.mubr.msk.f32.mxu0 %vm2122_vm0, %v2120_v1  ;;  %2011 = vmatpush3.bf16.msra.mxu0 %v2010_v45 }
 0x105   :  { %1882 = vmatmul.mubr.msk.f32.vlgmr.msra.gmra.mrb[10].mxu0 %vm233_vm3, %v2178_v11 }
 0x106   :  { %1884 = vmatprep.mubr.msk.f32.mxu0 %vm2122_vm0, %v2120_v1 }
 0x109   :  { %1885 = vmatmul.mubr.msk.f32.gmra.mrb[12].mxu0 %vm233_vm3, %v2187_v13 }
 0x10a   :  { %1887 = vmatprep.mubr.msk.f32.mxu0 %vm2122_vm0, %v2120_v1 }
 0x10d   :  { %1888 = vmatmul.mubr.msk.f32.gmra.mrb[14].mxu0 %vm233_vm3, %v2193_v14 }
 0x1d0   :  { %v1838_v58 = vpop.f32.mrb[6].mxu0 }
 0x1d1   :  { %v2062_v59 = vadd.f32 %v1838_v58, %v341_v56  ;;  %v527_v61 = vpop.f32.mrb[7].mxu0 }
 0x1d2   :  { %v2063_v2 = vadd.f32 %v527_v61, %v340_v57 }
 0x1d3   :  { %v2246_v8 = vadd.f32 %v2062_v59, %v1650_v60 }
 0x1d4   :  { %v2244_v5 = vadd.f32 %v2063_v2, %v1650_v60  ;;  %v1841_v6 = vpop.f32.mrb[8].mxu0 }
 0x1d5   :  { %v2064_v9 = vadd.f32 %v1841_v6, %v343_v3  ;;  %v537_v10 = vpop.f32.mrb[9].mxu0 }
 0x1d6   :  { %v2065_v16 = vadd.f32 %v537_v10, %v342_v4  ;;  %1850 = vmatprep.mubr.msk.f32.mxu1 %vm233_vm3, %v2244_v5 }
 0x1d7   :  { %1851 = vmatmul.mubr.msk.f32.vlgmr.msra.gmra.mrb[6].mxu1 %vm233_vm3, %v2246_v8  ;;  %v2254_v19 = vadd.f32 %v2064_v9, %v1650_v60 }
 0x1d8   :  { %v2252_v17 = vadd.f32 %v2065_v16, %v1650_v60  ;;  %2002 = vmatpush3.bf16.msra.mxu1 %v2001_v7  ;;  %v837_v61 = vpop.f32.mrb[10].mxu0 }
 0x1d9   :  { %2003 = vmatprep.subr.bf16.mxu1 %v2118_v0  ;;  %v1883_v62 = vpop.f32.mrb[11].mxu0 }
 0x1da   :  { %1853 = vmatprep.mubr.msk.f32.mxu1 %vm233_vm3, %v2252_v17  ;;  %v1341_v62 = vld [vmem:[%s2332_s25 + $0x10] sm:$0xff] }
 0x1db   :  { %1854 = vmatmul.mubr.msk.f32.gmra.mrb[8].mxu1 %vm233_vm3, %v2254_v19 }
 0x1dc   :  { %2005 = vmatpush3.bf16.msra.mxu1 %v2004_v18  ;;  %1864 = vmatprep.mubr.msk.f32.mxu1 %vm2122_vm0, %v2120_v1 }
 0x1df   :  { %1865 = vmatmul.mubr.msk.f32.vlgmr.msra.gmra.mrb[10].mxu1 %vm233_vm3, %v2178_v11  ;;  %v961_v11 = vld [vmem:[%s1608_s9] sm:$0xff] }
 0x1e0   :  { %1867 = vmatprep.mubr.msk.f32.mxu1 %vm2122_vm0, %v2120_v1 }
 0x1e3   :  { %1868 = vmatmul.mubr.msk.f32.gmra.mrb[12].mxu1 %vm233_vm3, %v2187_v13 }
 0x1e4   :  { %1870 = vmatprep.mubr.msk.f32.mxu1 %vm2122_vm0, %v2120_v1 }
 0x1e7   :  { %1871 = vmatmul.mubr.msk.f32.gmra.mrb[14].mxu1 %vm233_vm3, %v2193_v14 }
 0x2aa   :  { %v1852_v21 = vpop.f32.mrb[6].mxu1 }
 0x2ab   :  { %v650_v22 = vpop.f32.mrb[7].mxu1  ;;  %v656_v37 = vadd.f32 %v1852_v21, %v1651_v20 }
 0x2ac   :  { %v651_v23 = vadd.f32 %v1651_v20, %v650_v22 }
 0x2ae   :  { %v1855_v24 = vpop.f32.mrb[8].mxu1  ;;  %1896 = vmatprep.mubr.msk.f32.mxu1 %vm233_vm3, %v651_v23 }
 0x2af   :  { %v660_v25 = vpop.f32.mrb[9].mxu1  ;;  %v666_v39 = vadd.f32 %v1855_v24, %v1651_v20 }
 0x2b0   :  { %v661_v38 = vadd.f32 %v1651_v20, %v660_v25 }
 0x2b2   :  { %v746_v26 = vpop.f32.mrb[10].mxu1 }
 0x2b3   :  { %v1866_v27 = vpop.f32.mrb[11].mxu1  ;;  %v747_v30 = vadd.f32 %v1656_v28, %v746_v26 }
 0x2b6   :  { %v751_v29 = vpop.f32.mrb[12].mxu1 }
 0x2b7   :  { %v752_v31 = vadd.f32 %v1656_v28, %v751_v29  ;;  %v1869_v32 = vpop.f32.mrb[13].mxu1 }
 0x2b9   :  { %v2012_v33 = vpack.c.bf16 %v752_v31, %v747_v30  ;;  %v842_v30 = vpop.f32.mrb[12].mxu0 }
 0x2ba   :  { %v756_v34 = vpop.f32.mrb[14].mxu1  ;;  %v1886_v32 = vpop.f32.mrb[13].mxu0 }
 0x2bb   :  { %2014 = vmatprep.subr.msk.bf16.mxu1 %vm2013_vm6, %v2012_v33  ;;  %v757_v35 = vadd.f32 %v1656_v28, %v756_v34  ;;  %v1872_v36 = vpop.f32.mrb[15].mxu1  ;;  %v1660_v28 = vld [vmem:[%s1622_s13] ss:$0 sm:$0xff]  ;;  %v847_v34 = vpop.f32.mrb[14].mxu0 }
 0x2bc   :  { %2017 = vmatpush3.bf16.xpose.msk.msra.mxu1 %vm2013_vm6, %v2012_v33  ;;  %v838_v29 = vadd.f32 %v1660_v28, %v837_v61  ;;  %v843_v31 = vadd.f32 %v1660_v28, %v842_v30  ;;  %v1889_v36 = vpop.f32.mrb[15].mxu0  ;;  %v1340_v61 = vld [vmem:[%s2332_s25 + $0x8] sm:$0xff] }
 0x2bd   :  { %1894 = vmatprep.subr.msk.mxu1 %vm233_vm3, %v757_v35 }
 0x2be   :  { %v2018_v33 = vpack.c.bf16 %v843_v31, %v838_v29  ;;  %v1680_v29 = vld [vmem:[%s1626_s7] ss:$0 sm:$0xff] }
 0x2c0   :  { %2019 = vmatprep.subr.bf16.mxu0 %v2018_v33 }
 0x2c1   :  { %2021 = vmatpush3.bf16.msra.mxu0 %v2018_v33 }
 0x2c4   :  { %1895 = vmatpush3.xpose.msk.msra.mxu1 %vm233_vm3, %v757_v35  ;;  %v848_v35 = vadd.f32 %v1660_v28, %v847_v34 }
 0x2c6   :  { %1906 = vmatprep.subr.mxu0 %v848_v35 }
 0x2c7   :  { %1897 = vmatmul.mubr.msk.f32.vlgmr.msra.gmra.mrb[16].mxu1 %vm233_vm3, %v656_v37  ;;  %1907 = vmatpush3.msra.mxu0 %v848_v35  ;;  %v1111_v37 = vld [vmem:[%s1623_s17] sm:$0xff] }
 0x2c8   :  { %1899 = vmatprep.mubr.msk.f32.mxu1 %vm233_vm3, %v661_v38  ;;  %v1112_v38 = vld [vmem:[%s1623_s17 + $0x8] sm:$0xff] }
 0x2c9   :  { %v2022_v40 = vpack.c.bf16 %v1112_v38, %v1111_v37 }
 0x2cb   :  { %1900 = vmatmul.mubr.msk.f32.gmra.mrb[18].mxu1 %vm233_vm3, %v666_v39  ;;  %v1113_v39 = vld [vmem:[%s1623_s17 + $0x10] sm:$0xff]  ;;  %2023 = vmatprep.subr.bf16.mxu1 %v2022_v40 }
 0x2cc   :  { %v2026_v42 = vpack.c.bf16 %v1114_v41, %v1113_v39  ;;  %2025 = vmatpush3.bf16.msra.mxu1 %v2022_v40 }
 0x2ce   :  { %2027 = vmatprep.subr.bf16.mxu1 %v2026_v42 }
 0x2d0   :  { %2029 = vmatpush3.bf16.msra.mxu1 %v2026_v42  ;;  %v1462_v42 = vld [vmem:[%s1629_s3 + $0x10] sm:$0xff] }
 0x39a   :  { %v1898_v0 = vpop.f32.mrb[16].mxu1 }
 0x39b   :  { %v938_v46 = vpop.f32.mrb[17].mxu1  ;;  %v958_v47 = vmul.f32 0.17677669, %v1898_v0 }
 0x39c   :  { %v957_v48 = vmul.f32 0.17677669, %v938_v46 }
 0x39d   :  { %v966_v14 = vadd.f32 %v962_v49, %v958_v47 }
 0x39e   :  { %v1901_v50 = vpop.f32.mrb[18].mxu1  ;;  %v965_v51 = vadd.f32 %v961_v11, %v957_v48 }
 0x39f   :  { %v948_v13 = vpop.f32.mrb[19].mxu1  ;;  %v960_v53 = vmul.f32 0.17677669, %v1901_v50  ;;  %v972_v57 = vsel %vm344_vm4, %v966_v14, -inf }
 0x3a0   :  { %v959_v1 = vmul.f32 0.17677669, %v948_v13  ;;  %v969_v54 = vsel %vm344_vm4, %v965_v51, -inf }
 0x3a1   :  { %970 = vmax.xlane.f32.xlu0 %v969_v54  ;;  %v968_v59 = vadd.f32 %v964_v55, %v960_v53  ;;  %v1228_v53 = vld [vmem:[%s1625_s21 + $0x8] sm:$0xff] }
 0x3a2   :  { %v967_v56 = vadd.f32 %v963_v52, %v959_v1  ;;  %v1227_v52 = vld [vmem:[%s1625_s21] sm:$0xff] }
 0x3a3   :  { %v979_v60 = vsel %vm978_vm7, %v968_v59, -inf  ;;  %v2030_v1 = vpack.c.bf16 %v1228_v53, %v1227_v52 }
 0x3a4   :  { %v975_v58 = vsel %vm344_vm4, %v967_v56, -inf }
 0x3a5   :  { %973 = vmax.xlane.f32.xlu0 %v972_v57  ;;  %976 = vmax.xlane.f32.xlu1 %v975_v58  ;;  %v1229_v57 = vld [vmem:[%s1625_s21 + $0x10] sm:$0xff]  ;;  %v1230_v58 = vld [vmem:[%s1625_s21 + $0x18] sm:$0xff] }
 0x3a6   :  { %2031 = vmatprep.subr.bf16.mxu0 %v2030_v1 }
 0x3a9   :  { %980 = vmax.xlane.f32.xlu1 %v979_v60  ;;  %v1339_v60 = vld [vmem:[%s2332_s25] sm:$0xff] }
 0x42e   :  { %v971_v63 = vpop.xlane.xlu0 %970 }
 0x42f   :  { %v982_v2 = vsub.f32 %v965_v51, %v971_v63  ;;  %v2038_v63 = vpack.c.bf16 %v1340_v61, %v1339_v60 }
 0x431   :  { %v986_v3 = vmul.f32 1.442695, %v982_v2  ;;  %v1342_v2 = vld [vmem:[%s2332_s25 + $0x18] sm:$0xff]  ;;  %2039 = vmatprep.subr.bf16.mxu1 %v2038_v63 }
 0x432   :  { %v974_v4 = vpop.xlane.xlu0 %973  ;;  %v977_v6 = vpop.xlane.xlu1 %976 }
 0x433   :  { %2102 = vpow2.f32 %v986_v3  ;;  %v983_v7 = vsub.f32 %v966_v14, %v974_v4  ;;  %v984_v9 = vsub.f32 %v967_v56, %v977_v6  ;;  %v2042_v3 = vpack.c.bf16 %v1342_v2, %v1341_v62  ;;  %v1343_v4 = vld [vmem:[%s2332_s25 + $0x20] sm:$0xff]  ;;  %v1344_v6 = vld [vmem:[%s2332_s25 + $0x28] sm:$0xff]  ;;  %v1571_v2 = vld [vmem:[%s1606_s19 + $0x18] sm:$0x3f] }
 0x435   :  { %v988_v10 = vmul.f32 1.442695, %v983_v7  ;;  %v990_v12 = vmul.f32 1.442695, %v984_v9  ;;  %v2046_v7 = vpack.c.bf16 %v1344_v6, %v1343_v4 }
 0x436   :  { %v981_v15 = vpop.xlane.xlu1 %980 }
 0x437   :  { %2104 = vpow2.f32 %v988_v10  ;;  %v985_v16 = vsub.f32 %v968_v59, %v981_v15  ;;  %v2034_v59 = vpack.c.bf16 %v1230_v58, %v1229_v57  ;;  %v1568_v58 = vld [vmem:[%s1606_s19] sm:$0xff] }
 0x438   :  { %2106 = vpow2.f32 %v990_v12  ;;  %v1679_v12 = vld [vmem:[%s1624_s29] ss:$0 sm:$0xff] }
 0x439   :  { %v992_v18 = vmul.f32 1.442695, %v985_v16 }
 0x43b   :  { %2108 = vpow2.f32 %v992_v18 }
 0x43d   :  { %v2103_v20 = vpop.eup %2102 }
 0x43e   :  { %v994_v21 = vsel %vm344_vm4, %v2103_v20, 0.0 }
 0x43f   :  { %995 = vadd.xlane.f32.xlu0 %v994_v21 }
 0x441   :  { %v2105_v22 = vpop.eup %2104 }
 0x442   :  { %v2107_v23 = vpop.eup %2106  ;;  %v997_v24 = vsel %vm344_vm4, %v2105_v22, 0.0 }
 0x443   :  { %998 = vadd.xlane.f32.xlu1 %v997_v24  ;;  %v1000_v25 = vsel %vm344_vm4, %v2107_v23, 0.0 }
 0x444   :  { %1001 = vadd.xlane.f32.xlu0 %v1000_v25 }
 0x445   :  { %v2109_v26 = vpop.eup %2108 }
 0x446   :  { %v1003_v27 = vsel %vm978_vm7, %v2109_v26, 0.0 }
 0x447   :  { %1004 = vadd.xlane.f32.xlu1 %v1003_v27 }
 0x4cc   :  { %v996_v43 = vpop.xlane.xlu0 %995 }
 0x4cd   :  { %2110 = vrcp.f32 %v996_v43  ;;  %v1463_v43 = vld [vmem:[%s1629_s3 + $0x18] sm:$0xff] }
 0x4d0   :  { %v999_v44 = vpop.xlane.xlu1 %998 }
 0x4d1   :  { %v1002_v45 = vpop.xlane.xlu0 %1001  ;;  %2112 = vrcp.f32 %v999_v44  ;;  %v2058_v44 = vpack.c.bf16 %v1463_v43, %v1462_v42 }
 0x4d2   :  { %2114 = vrcp.f32 %v1002_v45 }
 0x4d4   :  { %v1005_v0 = vpop.xlane.xlu1 %1004 }
 0x4d5   :  { %2116 = vrcp.f32 %v1005_v0 }
 0x4d7   :  { %v2111_v46 = vpop.eup %2110 }
 0x4d8   :  { %v1010_v11 = vmul.f32 %v2111_v46, %v2103_v20  ;;  %v1689_v46 = vld [vmem:[%s1628_s11] ss:$0 sm:$0xff] }
 0x4da   :  { %1908 = vmatprep.mubr.msk.f32.mxu0 %vm344_vm4, %v1010_v11 }
 0x4db   :  { %v2113_v47 = vpop.eup %2112 }
 0x4dc   :  { %v2115_v48 = vpop.eup %2114  ;;  %v1011_v49 = vmul.f32 %v2113_v47, %v2105_v22 }
 0x4dd   :  { %v1012_v50 = vmul.f32 %v2115_v48, %v2107_v23 }
 0x4de   :  { %1909 = vmatmul.mubr.msk.f32.vlgmr.msra.gmra.mrb[16].mxu0 %vm344_vm4, %v1011_v49 }
 0x4df   :  { %v2117_v51 = vpop.eup %2116  ;;  %1911 = vmatprep.mubr.msk.f32.mxu0 %vm344_vm4, %v1012_v50  ;;  %2033 = vmatpush3.bf16.msra.mxu0 %v2030_v1 }
 0x4e0   :  { %v1013_v13 = vmul.f32 %v2117_v51, %v2109_v26  ;;  %2035 = vmatprep.subr.bf16.mxu0 %v2034_v59  ;;  %v1345_v26 = vld [vmem:[%s2332_s25 + $0x30] sm:$0xff] }
 0x4e2   :  { %1912 = vmatmul.mubr.msk.f32.gmra.mrb[18].mxu0 %vm344_vm4, %v1013_v13 }
 0x4e3   :  { %2037 = vmatpush3.bf16.msra.mxu0 %v2034_v59  ;;  %v1695_v59 = vld [vmem:[%s1607_s23] ss:$0 sm:$0xff] }
 0x5b1   :  { %v1910_v54 = vpop.f32.mrb[16].mxu0 }
 0x5b2   :  { %v1092_v14 = vpop.f32.mrb[17].mxu0 }
 0x5b3   :  { %1922 = vmatprep.mubr.msk.f32.mxu1 %vm233_vm3, %v1092_v14 }
 0x5b4   :  { %1923 = vmatmul.mubr.msk.f32.vlgmr.msra.gmra.mrb[20].mxu1 %vm233_vm3, %v1910_v54  ;;  %v1690_v54 = vld [vmem:[%s1630_s15] ss:$0 sm:$0xff] }
 0x5b5   :  { %v1913_v55 = vpop.f32.mrb[18].mxu0  ;;  %2041 = vmatpush3.bf16.msra.mxu1 %v2038_v63 }
 0x5b6   :  { %v1102_v56 = vpop.f32.mrb[19].mxu0  ;;  %2043 = vmatprep.subr.bf16.mxu1 %v2042_v3 }
 0x5b7   :  { %1925 = vmatprep.mubr.msk.f32.mxu1 %vm233_vm3, %v1102_v56 }
 0x5b8   :  { %1926 = vmatmul.mubr.msk.f32.gmra.mrb[22].mxu1 %vm233_vm3, %v1913_v55  ;;  %v1569_v55 = vld [vmem:[%s1606_s19 + $0x8] sm:$0xff] }
 0x5b9   :  { %2045 = vmatpush3.bf16.msra.mxu1 %v2042_v3 }
 0x5ba   :  { %2047 = vmatprep.subr.bf16.mxu1 %v2046_v7 }
 0x5bd   :  { %2049 = vmatpush3.bf16.msra.mxu1 %v2046_v7  ;;  %v1570_v7 = vld [vmem:[%s1606_s19 + $0x10] sm:$0xff] }
 0x687   :  { %v1924_v9 = vpop.f32.mrb[20].mxu1 }
 0x688   :  { %v1213_v10 = vadd.f32 %v1924_v9, %v2246_v8  ;;  %v1193_v15 = vpop.f32.mrb[21].mxu1 }
 0x689   :  { %v1212_v16 = vadd.f32 %v1193_v15, %v2244_v5  ;;  %v1346_v5 = vld [vmem:[%s2332_s25 + $0x38] sm:$0xff] }
 0x68a   :  { %v1224_v21 = vadd.f32 %v1679_v12, %v1213_v10  ;;  %v2050_v27 = vpack.c.bf16 %v1346_v5, %v1345_v26 }
 0x68b   :  { %v1223_v18 = vadd.f32 %v1679_v12, %v1212_v16  ;;  %v1927_v20 = vpop.f32.mrb[22].mxu1 }
 0x68c   :  { %v1215_v22 = vadd.f32 %v1927_v20, %v2254_v19  ;;  %v1203_v23 = vpop.f32.mrb[23].mxu1  ;;  %2051 = vmatprep.subr.bf16.mxu1 %v2050_v27  ;;  %v1461_v19 = vld [vmem:[%s1629_s3 + $0x8] sm:$0xff] }
 0x68d   :  { %v1214_v24 = vadd.f32 %v1203_v23, %v2252_v17  ;;  %1936 = vmatprep.mubr.msk.f32.mxu0 %vm233_vm3, %v1223_v18  ;;  %2053 = vmatpush3.bf16.msra.mxu1 %v2050_v27  ;;  %v1460_v17 = vld [vmem:[%s1629_s3] sm:$0xff] }
 0x68e   :  { %1937 = vmatmul.mubr.msk.f32.vlgmr.msra.gmra.mrb[20].mxu0 %vm233_vm3, %v1224_v21  ;;  %v1226_v8 = vadd.f32 %v1679_v12, %v1215_v22  ;;  %v2054_v28 = vpack.c.bf16 %v1461_v19, %v1460_v17 }
 0x68f   :  { %v1225_v25 = vadd.f32 %v1679_v12, %v1214_v24 }
 0x690   :  { %2055 = vmatprep.subr.bf16.mxu0 %v2054_v28 }
 0x691   :  { %1939 = vmatprep.mubr.msk.f32.mxu0 %vm233_vm3, %v1225_v25  ;;  %2057 = vmatpush3.bf16.msra.mxu0 %v2054_v28 }
 0x692   :  { %1940 = vmatmul.mubr.msk.f32.gmra.mrb[22].mxu0 %vm233_vm3, %v1226_v8  ;;  %2059 = vmatprep.subr.bf16.mxu0 %v2058_v44 }
 0x695   :  { %2061 = vmatpush3.bf16.msra.mxu0 %v2058_v44 }
 0x761   :  { %v1938_v30 = vpop.f32.mrb[20].mxu0 }
 0x762   :  { %v1322_v31 = vadd.f32 %v1938_v30, %v1680_v29  ;;  %v1316_v32 = vpop.f32.mrb[21].mxu0 }
 0x763   :  { %v1317_v33 = vadd.f32 %v1680_v29, %v1316_v32 }
 0x764   :  { %v1336_v36 = vmax.f32 %v1322_v31, 0.0 }
 0x765   :  { %v1335_v34 = vmax.f32 %v1317_v33, 0.0  ;;  %v1941_v35 = vpop.f32.mrb[22].mxu0 }
 0x766   :  { %v1332_v37 = vadd.f32 %v1941_v35, %v1680_v29  ;;  %v1326_v38 = vpop.f32.mrb[23].mxu0 }
 0x767   :  { %v1327_v39 = vadd.f32 %v1680_v29, %v1326_v38  ;;  %1958 = vmatprep.mubr.msk.f32.mxu1 %vm1347_vm8, %v1335_v34 }
 0x768   :  { %1959 = vmatmul.mubr.msk.f32.vlgmr.msra.gmra.mrb[24].mxu1 %vm1347_vm8, %v1336_v36  ;;  %v1338_v41 = vmax.f32 %v1332_v37, 0.0 }
 0x769   :  { %v1337_v40 = vmax.f32 %v1327_v39, 0.0 }
 0x76b   :  { %1961 = vmatprep.mubr.msk.f32.mxu1 %vm1347_vm8, %v1337_v40 }
 0x76c   :  { %1962 = vmatmul.mubr.msk.f32.gmra.mrb[26].mxu1 %vm1347_vm8, %v1338_v41 }
 0x83b   :  { %v1960_v45 = vpop.f32.mrb[24].mxu1 }
 0x83c   :  { %v1446_v0 = vadd.f32 %v1960_v45, %v1224_v21  ;;  %v1426_v11 = vpop.f32.mrb[25].mxu1 }
 0x83d   :  { %v1445_v47 = vadd.f32 %v1426_v11, %v1223_v18 }
 0x83e   :  { %v1457_v50 = vadd.f32 %v1689_v46, %v1446_v0 }
 0x83f   :  { %v1456_v48 = vadd.f32 %v1689_v46, %v1445_v47  ;;  %v1963_v49 = vpop.f32.mrb[26].mxu1 }
 0x840   :  { %v1448_v51 = vadd.f32 %v1963_v49, %v1226_v8  ;;  %v1436_v13 = vpop.f32.mrb[27].mxu1 }
 0x841   :  { %v1447_v52 = vadd.f32 %v1436_v13, %v1225_v25  ;;  %1972 = vmatprep.mubr.msk.f32.mxu0 %vm233_vm3, %v1456_v48 }
 0x842   :  { %1973 = vmatmul.mubr.msk.f32.vlgmr.msra.gmra.mrb[24].mxu0 %vm233_vm3, %v1457_v50  ;;  %v1459_v1 = vadd.f32 %v1689_v46, %v1448_v51 }
 0x843   :  { %v1458_v53 = vadd.f32 %v1689_v46, %v1447_v52 }
 0x845   :  { %1975 = vmatprep.mubr.msk.f32.mxu0 %vm233_vm3, %v1458_v53 }
 0x846   :  { %1976 = vmatmul.mubr.msk.f32.gmra.mrb[26].mxu0 %vm233_vm3, %v1459_v1 }
 0x915   :  { %v1974_v14 = vpop.f32.mrb[24].mxu0 }
 0x916   :  { %v1555_v56 = vadd.f32 %v1974_v14, %v1690_v54  ;;  %v1549_v57 = vpop.f32.mrb[25].mxu0 }
 0x917   :  { %v1550_v60 = vadd.f32 %v1690_v54, %v1549_v57 }
 0x918   :  { %v1573_v61 = vadd.f32 %v1569_v55, %v1555_v56 }
 0x919   :  { %v1572_v62 = vadd.f32 %v1568_v58, %v1550_v60  ;;  %v1977_v63 = vpop.f32.mrb[26].mxu0 }
 0x91a   :  { %1577 = vst.msk [vmem:[%s1631_s27 + $0x8] sm:$0xff] %vm132_vm2, %v1573_v61  ;;  %v1589_v3 = vadd.f32 %v1695_v59, %v1573_v61  ;;  %v1565_v4 = vadd.f32 %v1977_v63, %v1690_v54  ;;  %v1559_v6 = vpop.f32.mrb[27].mxu0 }
 0x91b   :  { %1576 = vst.msk [vmem:[%s1631_s27] sm:$0xff] %vm132_vm2, %v1572_v62  ;;  %v1588_v9 = vadd.f32 %v1695_v59, %v1572_v62  ;;  %v1560_v10 = vadd.f32 %v1690_v54, %v1559_v6 }
 0x91c   :  { %1593 = vst.msk [vmem:[%s1632_s1 + $0x8] sm:$0xff] %vm132_vm2, %v1589_v3  ;;  %v1575_v12 = vadd.f32 %v1571_v2, %v1565_v4 }
 0x91d   :  { %1592 = vst.msk [vmem:[%s1632_s1] sm:$0xff] %vm132_vm2, %v1588_v9  ;;  %v1574_v15 = vadd.f32 %v1570_v7, %v1560_v10 }
 0x91e   :  { %1580 = vst.msk [vmem:[%s1631_s27 + $0x18] sm:$0x3f] %vm1579_vm9, %v1575_v12  ;;  %v1591_v16 = vadd.f32 %v1695_v59, %v1575_v12 }
 0x91f   :  { %1578 = vst.msk [vmem:[%s1631_s27 + $0x10] sm:$0xff] %vm132_vm2, %v1574_v15  ;;  %v1590_v18 = vadd.f32 %v1695_v59, %v1574_v15 }
 0x920   :  { %1595 = vst.msk [vmem:[%s1632_s1 + $0x18] sm:$0x3f] %vm1579_vm9, %v1591_v16 }
 0x921   :  { %1594 = vst.msk [vmem:[%s1632_s1 + $0x10] sm:$0xff] %vm132_vm2, %v1590_v18 }

</bundles_post_ra>
